<compile_context>
chip_gen: v5e
topology: v5e:2x2
jax: 0.10.0
libtpu: 0.0.40
codegen_flags: <defaults>
</compile_context>

<pallas_src>
import jax
import jax.numpy as jnp
from jax.experimental import pallas as pl
from jax.experimental.pallas import tpu as pltpu


_LANE = 128
_BATCH_ALIGN = 16          # bf16 sublane packing: keep batch tile a multiple of 16
_SINGLE_STEP_MAX = 512     # below this, a single grid step is cheapest
_MAX_ROWS_PER_STEP = 2048  # cap rows per step for very large batches


def _round_up(n, m):
    return ((n + m - 1) // m) * m


def _qnet_kernel(x_ref, w1_ref, b1_ref, w2_ref, b2_ref, w3_ref, b3_ref, o_ref):
    # x arrives as f32 (no wrapper-side cast pass); cast to bf16 for the MXU.
    x = x_ref[...].astype(jnp.bfloat16)

    h1 = jnp.dot(x, w1_ref[...], preferred_element_type=jnp.float32)
    h1 = jnp.maximum(h1 + b1_ref[...], 0.0)

    h2 = jnp.dot(h1.astype(jnp.bfloat16), w2_ref[...],
                 preferred_element_type=jnp.float32)
    h2 = jnp.maximum(h2 + b2_ref[...], 0.0)

    out = jnp.dot(h2.astype(jnp.bfloat16), w3_ref[...],
                  preferred_element_type=jnp.float32)

    # The last matmul runs at the lane-padded width (Doutp) in VMEM, but only the
    # real output columns are written back to HBM (output array is unpadded).
    n_out = o_ref.shape[1]
    o_ref[...] = (out[:, :n_out] + b3_ref[...]).astype(o_ref.dtype)


def prepare_params(params):
    """Pad / cast raw (w, b) params ONCE, outside the per-call forward.

    Weights -> bf16, lane-padded; biases -> f32 (1, HIDp). b3 is kept unpadded
    so the true output_dim is recoverable from its shape."""
    w1, b1, w2, b2, w3, b3 = params
    _, hidden = w1.shape
    output_dim = w3.shape[1]
    HIDp = _round_up(hidden, _LANE)
    Doutp = _round_up(output_dim, _LANE)
    f32, bf16 = jnp.float32, jnp.bfloat16

    w1_p = jnp.pad(w1, ((0, 0), (0, HIDp - hidden))).astype(bf16)
    b1_p = jnp.pad(b1, (0, HIDp - hidden)).reshape(1, HIDp).astype(f32)
    w2_p = jnp.pad(w2, ((0, HIDp - hidden), (0, HIDp - hidden))).astype(bf16)
    b2_p = jnp.pad(b2, (0, HIDp - hidden)).reshape(1, HIDp).astype(f32)
    w3_p = jnp.pad(w3, ((0, HIDp - hidden), (0, Doutp - output_dim))).astype(bf16)
    b3_p = b3.reshape(1, output_dim).astype(f32)  # unpadded -> defines output_dim
    return (w1_p, b1_p, w2_p, b2_p, w3_p, b3_p)


def _choose_tiling(B):
    """Pick (rows_per_step, num_steps) for the batch grid.

    Small B -> single step. Larger B -> an EVEN number of steps (balanced split
    across v7x's 2 TCs; no-op on v5e/v6e), each <= ~_MAX_ROWS_PER_STEP rows,
    sized to minimize tail padding."""
    if B <= _SINGLE_STEP_MAX:
        return _round_up(max(B, _BATCH_ALIGN), _BATCH_ALIGN), 1
    nsteps = 2 * pl.cdiv(B, 2 * _MAX_ROWS_PER_STEP)
    tb = _round_up(pl.cdiv(B, nsteps), _BATCH_ALIGN)
    return tb, nsteps


@jax.jit
def qnet_forward(x, prepared):
    """x: (B, input_dim) float32 -> (B, output_dim) float32 Q-values."""
    w1_p, b1_p, w2_p, b2_p, w3_p, b3_p = prepared
    B, input_dim = x.shape
    HIDp = w1_p.shape[1]
    Doutp = w3_p.shape[1]
    output_dim = b3_p.shape[1]

    TB, nsteps = _choose_tiling(B)
    Bp = TB * nsteps
    x_p = jnp.pad(x, ((0, Bp - B), (0, 0))) if Bp != B else x

    flops = 2 * Bp * (input_dim * HIDp + HIDp * HIDp + HIDp * Doutp)
    bytes_accessed = (
        Bp * input_dim * 4 + Bp * output_dim * 4
        + (w1_p.size + w2_p.size + w3_p.size) * 2
        + (b1_p.size + b2_p.size + b3_p.size) * 4
    )

    out_p = pl.pallas_call(
        _qnet_kernel,
        out_shape=jax.ShapeDtypeStruct((Bp, output_dim), jnp.float32),
        grid_spec=pl.GridSpec(
            grid=(nsteps,),
            in_specs=[
                # activations: one batch tile per grid step (auto double-buffered)
                pl.BlockSpec((TB, input_dim), lambda i: (i, 0)),
                # weights / biases: constant block index -> resident in VMEM
                pl.BlockSpec((input_dim, HIDp), lambda i: (0, 0)),
                pl.BlockSpec((1, HIDp), lambda i: (0, 0)),
                pl.BlockSpec((HIDp, HIDp), lambda i: (0, 0)),
                pl.BlockSpec((1, HIDp), lambda i: (0, 0)),
                pl.BlockSpec((HIDp, Doutp), lambda i: (0, 0)),
                pl.BlockSpec((1, output_dim), lambda i: (0, 0)),
            ],
            # unpadded output columns (block last-dim == full array dim is legal)
            out_specs=pl.BlockSpec((TB, output_dim), lambda i: (i, 0)),
        ),
        compiler_params=pltpu.CompilerParams(
            dimension_semantics=("parallel",),  # v7x: shard batch across 2 TCs
        ),
        cost_estimate=pl.CostEstimate(
            flops=flops, transcendentals=0, bytes_accessed=bytes_accessed),
    )(x_p, w1_p, b1_p, w2_p, b2_p, w3_p, b3_p)

    return out_p[:B] if Bp != B else out_p


def init_qnet_params(key, input_dim, output_dim, hidden=128):
    """PyTorch-style nn.Linear init (uniform +/- 1/sqrt(fan_in)).

    Weights are stored as (in_features, out_features)."""
    keys = jax.random.split(key, 6)

    def linear(kw, kb, fan_in, fan_out):
        bound = 1.0 / jnp.sqrt(jnp.float32(fan_in))
        w = jax.random.uniform(kw, (fan_in, fan_out), jnp.float32, -bound, bound)
        b = jax.random.uniform(kb, (fan_out,), jnp.float32, -bound, bound)
        return w, b

    w1, b1 = linear(keys[0], keys[1], input_dim, hidden)
    w2, b2 = linear(keys[2], keys[3], hidden, hidden)
    w3, b3 = linear(keys[4], keys[5], hidden, output_dim)
    return (w1, b1, w2, b2, w3, b3)


def qnet_reference_f32(x, params):
    """Pure-JAX f32 reference matching the PyTorch forward."""
    w1, b1, w2, b2, w3, b3 = params
    h1 = jnp.maximum(x @ w1 + b1, 0.0)
    h2 = jnp.maximum(h1 @ w2 + b2, 0.0)
    return h2 @ w3 + b3


def qnet_reference_bf16(x, params):
    """Reference with the same bf16-input / f32-accumulate numerics as the kernel."""
    w1, b1, w2, b2, w3, b3 = params
    bf16, f32 = jnp.bfloat16, jnp.float32
    h1 = jnp.dot(x.astype(bf16), w1.astype(bf16), preferred_element_type=f32) + b1
    h1 = jnp.maximum(h1, 0.0)
    h2 = jnp.dot(h1.astype(bf16), w2.astype(bf16), preferred_element_type=f32) + b2
    h2 = jnp.maximum(h2, 0.0)
    return jnp.dot(h2.astype(bf16), w3.astype(bf16), preferred_element_type=f32) + b3


if __name__ == "__main__":
    INPUT_DIM = 8    # e.g. LunarLander's 8-dim observation
    OUTPUT_DIM = 4   # number of discrete actions

    key = jax.random.PRNGKey(0)
    k_params, k_small, k_big = jax.random.split(key, 3)
    params = init_qnet_params(k_params, INPUT_DIM, OUTPUT_DIM)
    prepared = prepare_params(params)   # one-time pad/cast, reused across calls

    # Small interactive-style batch (single grid step).
    x_small = jax.random.normal(k_small, (2, INPUT_DIM), jnp.float32)
    out_small = jax.block_until_ready(qnet_forward(x_small, prepared))
    assert out_small.shape == (2, OUTPUT_DIM), out_small.shape
    ref_bf16 = qnet_reference_bf16(x_small, params)
    ref_f32 = qnet_reference_f32(x_small, params)
    assert jnp.allclose(out_small, ref_bf16, atol=1e-4, rtol=1e-4), "mismatch vs bf16 ref"
    assert jnp.allclose(out_small, ref_f32, atol=5e-2, rtol=5e-2), "mismatch vs f32 ref"

    # Training-style batch: exercises the multi-step grid + batch-padding path
    # (B=2500 -> 4 even steps of 640 rows, ~2% tail padding).
    x_big = jax.random.normal(k_big, (2500, INPUT_DIM), jnp.float32)
    out_big = jax.block_until_ready(qnet_forward(x_big, prepared))
    assert out_big.shape == (2500, OUTPUT_DIM), out_big.shape
    ref_big = qnet_reference_bf16(x_big, params)
    assert jnp.allclose(out_big, ref_big, atol=1e-4, rtol=1e-4), "mismatch (big batch)"

    print("KERNEL_OK")
</pallas_src>

<mosaic_0001>
module attributes {stable_mosaic.version = 11 : i64} {
  func.func @_qnet_kernel(%arg0: i32, %arg1: memref<16x8xf32, #tpu.memory_space<vmem>>, %arg2: memref<8x128xbf16, #tpu.memory_space<vmem>>, %arg3: memref<1x128xf32, #tpu.memory_space<vmem>>, %arg4: memref<128x128xbf16, #tpu.memory_space<vmem>>, %arg5: memref<1x128xf32, #tpu.memory_space<vmem>>, %arg6: memref<128x128xbf16, #tpu.memory_space<vmem>>, %arg7: memref<1x4xf32, #tpu.memory_space<vmem>>, %arg8: memref<16x4xf32, #tpu.memory_space<vmem>>) attributes {dimension_semantics = [#tpu.dimension_semantics<parallel>], iteration_bounds = array<i64: 1>, scalar_prefetch = 0 : i64, scratch_operands = 0 : i64, tpu.core_type = #tpu.core_type<tc>, window_params = [{transform_indices = @transform_0, window_bounds = array<i64: 16, 8>}, {pipeline_mode = #tpu.pipeline_mode<synchronous>, transform_indices = @transform_1, window_bounds = array<i64: 8, 128>}, {pipeline_mode = #tpu.pipeline_mode<synchronous>, transform_indices = @transform_2, window_bounds = array<i64: 1, 128>}, {pipeline_mode = #tpu.pipeline_mode<synchronous>, transform_indices = @transform_3, window_bounds = array<i64: 128, 128>}, {pipeline_mode = #tpu.pipeline_mode<synchronous>, transform_indices = @transform_4, window_bounds = array<i64: 1, 128>}, {pipeline_mode = #tpu.pipeline_mode<synchronous>, transform_indices = @transform_5, window_bounds = array<i64: 128, 128>}, {pipeline_mode = #tpu.pipeline_mode<synchronous>, transform_indices = @transform_6, window_bounds = array<i64: 1, 4>}, {transform_indices = @transform_7, window_bounds = array<i64: 16, 4>}]} {
    %c0 = arith.constant 0 : index
    %c0_0 = arith.constant 0 : index
    %0 = vector.load %arg1[%c0, %c0_0] : memref<16x8xf32, #tpu.memory_space<vmem>>, vector<16x8xf32>
    %1 = arith.truncf %0 : vector<16x8xf32> to vector<16x8xbf16>
    %c0_1 = arith.constant 0 : index
    %c0_2 = arith.constant 0 : index
    %2 = vector.load %arg2[%c0_1, %c0_2] : memref<8x128xbf16, #tpu.memory_space<vmem>>, vector<8x128xbf16>
    %cst = arith.constant dense<0.000000e+00> : vector<16x128xf32>
    %3 = tpu.matmul %1, %2, %cst {dimension_numbers = #tpu.dot_dimension_numbers<[1], [0], [0], [1], [0, 0, 1, 1], [], []>} : vector<16x8xbf16>, vector<8x128xbf16>, vector<16x128xf32> -> vector<16x128xf32>
    %c0_3 = arith.constant 0 : index
    %c0_4 = arith.constant 0 : index
    %4 = vector.load %arg3[%c0_3, %c0_4] : memref<1x128xf32, #tpu.memory_space<vmem>>, vector<1x128xf32>
    %5 = vector.broadcast %4 : vector<1x128xf32> to vector<16x128xf32>
    %6 = arith.addf %3, %5 : vector<16x128xf32>
    %cst_5 = arith.constant 0.000000e+00 : f32
    %7 = vector.broadcast %cst_5 : f32 to vector<16x128xf32>
    %8 = arith.maximumf %6, %7 : vector<16x128xf32>
    %9 = arith.truncf %8 : vector<16x128xf32> to vector<16x128xbf16>
    %c0_6 = arith.constant 0 : index
    %c0_7 = arith.constant 0 : index
    %10 = vector.load %arg4[%c0_6, %c0_7] : memref<128x128xbf16, #tpu.memory_space<vmem>>, vector<128x128xbf16>
    %cst_8 = arith.constant dense<0.000000e+00> : vector<16x128xf32>
    %11 = tpu.matmul %9, %10, %cst_8 {dimension_numbers = #tpu.dot_dimension_numbers<[1], [0], [0], [1], [0, 0, 1, 1], [], []>} : vector<16x128xbf16>, vector<128x128xbf16>, vector<16x128xf32> -> vector<16x128xf32>
    %c0_9 = arith.constant 0 : index
    %c0_10 = arith.constant 0 : index
    %12 = vector.load %arg5[%c0_9, %c0_10] : memref<1x128xf32, #tpu.memory_space<vmem>>, vector<1x128xf32>
    %13 = vector.broadcast %12 : vector<1x128xf32> to vector<16x128xf32>
    %14 = arith.addf %11, %13 : vector<16x128xf32>
    %cst_11 = arith.constant 0.000000e+00 : f32
    %15 = vector.broadcast %cst_11 : f32 to vector<16x128xf32>
    %16 = arith.maximumf %14, %15 : vector<16x128xf32>
    %17 = arith.truncf %16 : vector<16x128xf32> to vector<16x128xbf16>
    %c0_12 = arith.constant 0 : index
    %c0_13 = arith.constant 0 : index
    %18 = vector.load %arg6[%c0_12, %c0_13] : memref<128x128xbf16, #tpu.memory_space<vmem>>, vector<128x128xbf16>
    %cst_14 = arith.constant dense<0.000000e+00> : vector<16x128xf32>
    %19 = tpu.matmul %17, %18, %cst_14 {dimension_numbers = #tpu.dot_dimension_numbers<[1], [0], [0], [1], [0, 0, 1, 1], [], []>} : vector<16x128xbf16>, vector<128x128xbf16>, vector<16x128xf32> -> vector<16x128xf32>
    %20 = vector.extract_strided_slice %19 {offsets = [0, 0], sizes = [16, 4], strides = [1, 1]} : vector<16x128xf32> to vector<16x4xf32>
    %c0_15 = arith.constant 0 : index
    %c0_16 = arith.constant 0 : index
    %21 = vector.load %arg7[%c0_15, %c0_16] : memref<1x4xf32, #tpu.memory_space<vmem>>, vector<1x4xf32>
    %22 = vector.broadcast %21 : vector<1x4xf32> to vector<16x4xf32>
    %23 = arith.addf %20, %22 : vector<16x4xf32>
    %c0_17 = arith.constant 0 : index
    %c0_18 = arith.constant 0 : index
    %24 = vector.load %arg8[%c0_17, %c0_18] : memref<16x4xf32, #tpu.memory_space<vmem>>, vector<16x4xf32>
    tpu.vector_store %arg8[%c0_17, %c0_18], %23 {strides = array<i32>} : memref<16x4xf32, #tpu.memory_space<vmem>>, vector<16x4xf32>,
    return
  }
  func.func @transform_0(%arg0: i32) -> (i32, i32) {
    %c0_i32 = arith.constant 0 : i32
    %c0_i32_0 = arith.constant 0 : i32
    return %arg0, %c0_i32 : i32, i32
  }
  func.func @transform_1(%arg0: i32) -> (i32, i32) {
    %c0_i32 = arith.constant 0 : i32
    %c0_i32_0 = arith.constant 0 : i32
    %c0_i32_1 = arith.constant 0 : i32
    return %c0_i32, %c0_i32_0 : i32, i32
  }
  func.func @transform_2(%arg0: i32) -> (i32, i32) {
    %c0_i32 = arith.constant 0 : i32
    %c0_i32_0 = arith.constant 0 : i32
    %c0_i32_1 = arith.constant 0 : i32
    return %c0_i32, %c0_i32_0 : i32, i32
  }
  func.func @transform_3(%arg0: i32) -> (i32, i32) {
    %c0_i32 = arith.constant 0 : i32
    %c0_i32_0 = arith.constant 0 : i32
    %c0_i32_1 = arith.constant 0 : i32
    return %c0_i32, %c0_i32_0 : i32, i32
  }
  func.func @transform_4(%arg0: i32) -> (i32, i32) {
    %c0_i32 = arith.constant 0 : i32
    %c0_i32_0 = arith.constant 0 : i32
    %c0_i32_1 = arith.constant 0 : i32
    return %c0_i32, %c0_i32_0 : i32, i32
  }
  func.func @transform_5(%arg0: i32) -> (i32, i32) {
    %c0_i32 = arith.constant 0 : i32
    %c0_i32_0 = arith.constant 0 : i32
    %c0_i32_1 = arith.constant 0 : i32
    return %c0_i32, %c0_i32_0 : i32, i32
  }
  func.func @transform_6(%arg0: i32) -> (i32, i32) {
    %c0_i32 = arith.constant 0 : i32
    %c0_i32_0 = arith.constant 0 : i32
    %c0_i32_1 = arith.constant 0 : i32
    return %c0_i32, %c0_i32_0 : i32, i32
  }
  func.func @transform_7(%arg0: i32) -> (i32, i32) {
    %c0_i32 = arith.constant 0 : i32
    %c0_i32_0 = arith.constant 0 : i32
    return %arg0, %c0_i32 : i32, i32
  }
}

</mosaic_0001>

<bundles_post_ra>
// kernel: qnet_forward.1
= control target key start
LH: loop header
LB: loop body
LE: loop exit
PB: predicated region body
PF: predicated region fallthrough
CT: control target
= control target key end

     0   :  { %12 = vsyncpa [#allocation3], 0  ;;  %s484_s0 = inlined_call_operand.vmem [shape: f32[16,8], index: 0, kind: input, shape index: {}]   ;;  %s485_s1 = inlined_call_operand.vmem [shape: bf16[8,128], index: 1, kind: input, shape index: {}]   ;;  %s486_s2 = inlined_call_operand.vmem [shape: f32[1,128], index: 2, kind: input, shape index: {}]   ;;  %s487_s3 = inlined_call_operand.hbm [shape: bf16[128,128], index: 3, kind: input, shape index: {}]   ;;  %s488_s4 = inlined_call_operand.vmem [shape: f32[1,128], index: 4, kind: input, shape index: {}]   ;;  %s489_s5 = inlined_call_operand.hbm [shape: bf16[128,128], index: 5, kind: input, shape index: {}]   ;;  %s490_s6 = inlined_call_operand.vmem [shape: f32[1,4], index: 6, kind: input, shape index: {}]   ;;  %s491_s7 = inlined_call_operand.vmem [shape: f32[16,4], index: 7, kind: output, shape index: {}]  }
   0x1   :  { %s24_s26 = sshll.u32 %s487_s3, 4  ;;  %s25_s26 = int_to_ptr.hbm [resolvable:$true] %s24_s26 }
   0x2   :  { %13 = vsyncpa [#allocation5], 0  ;;  %s410_s27 = smov [#allocation2]   ;;  %s39_s8 = sshll.u32 %s489_s5, 4  ;;  %s40_s8 = int_to_ptr.hbm [resolvable:$true] %s39_s8 }
   0x3   :  { %s26_s28 = sshll.u32 %s410_s27, 4  ;;  %s411_s9 = smov 64   ;;  %s27_s28 = int_to_ptr.vmem [resolvable:$true] %s26_s28 }
   0x4   :  { %s412_s10 = smov 4   ;;  %s413_s11 = smov [#allocation4]  }
   0x5   :  { %32 = dma.hbm_to_vmem [thread:$0]  %s25_s26, 1024, %s27_s28, [#allocation3], %s411_s9, %s411_s9, %s412_s10  }
   0x6   :  { %s41_s12 = sshll.u32 %s413_s11, 4  ;;  %s42_s12 = int_to_ptr.vmem [resolvable:$true] %s41_s12 }
   0x7   :  { %47 = dma.hbm_to_vmem [thread:$0]  %s40_s8, 1024, %s42_s12, [#allocation5], %s411_s9, %s411_s9, %s412_s10  }
   0x8   :  { %406 = dma.done.wait [#allocation3], 1024  }
   0x9   :  { %407 = vsyncadd [#allocation3], 4294966272 }
   0xa   :  { %408 = dma.done.wait [#allocation5], 1024  }
   0xb   :  { %409 = vsyncadd [#allocation5], 4294966272  ;;  %vm71_vm0 = vcmask 1043456   ;;  %v62_v0 = vld [vmem:[%s485_s1] sm:$0xf]  ;;  %v60_v2 = vld [vmem:[%s484_s0 + $0x8] sm:$0xff] }
   0xc   :  { %v59_v1 = vld [vmem:[%s484_s0] sm:$0xff]  ;;  %v73_v3 = vsel %vm71_vm0, %v62_v0, 0  ;;  %v342_v5 = vld [vmem:[#allocation2 + $0x38] sm:$0xff]  ;;  %vm67_vm1 = vcmask 64512   ;;  %v341_v6 = vld [vmem:[#allocation2 + $0x30] sm:$0xff]  ;;  %vm261_vm2 = vcmask 31744  }
   0xd   :  { %v61_v4 = vpack.c.bf16 %v60_v2, %v59_v1  ;;  %82 = vmatpush.bf16.msra.mxu0 %v73_v3  ;;  %160 = vmatpush.bf16.msra.mxu1 %v342_v5  ;;  %v340_v7 = vld [vmem:[#allocation2 + $0x28] sm:$0xff]  ;;  %v339_v8 = vld [vmem:[#allocation2 + $0x20] sm:$0xff]  ;;  %v338_v9 = vld [vmem:[#allocation2 + $0x18] sm:$0xff] }
   0xe   :  { %v337_v10 = vld [vmem:[#allocation2 + $0x10] sm:$0xff]  ;;  %v336_v11 = vld [vmem:[#allocation2 + $0x8] sm:$0xff]  ;;  %v335_v12 = vld [vmem:[#allocation2] sm:$0xff] }
   0xf   :  { %v350_v13 = vld [vmem:[#allocation4 + $0x38] sm:$0xff]  ;;  %v349_v14 = vld [vmem:[#allocation4 + $0x30] sm:$0xff]  ;;  %v348_v15 = vld [vmem:[#allocation4 + $0x28] sm:$0xff] }
  0x10   :  { %270 = vmatmul.msk.bf16.vlgmr.msra.gmra.mxu0 %vm67_vm1, %v61_v4  ;;  %241 = vmatpush.bf16.msra.mxu2 %v350_v13  ;;  %v347_v16 = vld [vmem:[#allocation4 + $0x20] sm:$0xff]  ;;  %v346_v25 = vld [vmem:[#allocation4 + $0x18] sm:$0xff]  ;;  %v345_v26 = vld [vmem:[#allocation4 + $0x10] sm:$0xff] }
  0x11   :  { %161 = vmatpush.bf16.msra.mxu1 %v341_v6  ;;  %v355_v18 = vld [vmem:[%s486_s2] ss:$0 sm:$0xff]  ;;  %v344_v27 = vld [vmem:[#allocation4 + $0x8] sm:$0xff] }
  0x12   :  { %v343_v28 = vld [vmem:[#allocation4] sm:$0xff] }
  0x13   :  { %v356_v30 = vld [vmem:[%s488_s4] ss:$0 sm:$0xff] }
  0x14   :  { %242 = vmatpush.bf16.msra.mxu2 %v349_v14  ;;  %v357_v37 = vld [vmem:[%s490_s6] ss:$0 sm:$0xff] }
  0x15   :  { %162 = vmatpush.bf16.msra.mxu1 %v340_v7 }
  0x18   :  { %243 = vmatpush.bf16.msra.mxu2 %v348_v15 }
  0x19   :  { %163 = vmatpush.bf16.msra.mxu1 %v339_v8 }
  0x1c   :  { %244 = vmatpush.bf16.msra.mxu2 %v347_v16 }
  0x1d   :  { %164 = vmatpush.bf16.msra.mxu1 %v338_v9 }
  0x20   :  { %245 = vmatpush.bf16.msra.mxu2 %v346_v25 }
  0x21   :  { %165 = vmatpush.bf16.msra.mxu1 %v337_v10 }
  0x24   :  { %246 = vmatpush.bf16.msra.mxu2 %v345_v26 }
  0x25   :  { %166 = vmatpush.bf16.msra.mxu1 %v336_v11 }
  0x28   :  { %247 = vmatpush.bf16.msra.mxu2 %v344_v27 }
  0x29   :  { %167 = vmatpush.bf16.msra.mxu1 %v335_v12 }
  0x2c   :  { %248 = vmatpush.bf16.msra.mxu2 %v343_v28 }
  0x8d   :  { %v84_v17 = vpop.f32.mrf.mxu0 }
  0x8e   :  { %v85_v19 = vadd.f32 %v355_v18, %v84_v17 }
  0x90   :  { %v89_v22 = vmax.f32 %v85_v19, 0.0 }
  0x95   :  { %v86_v20 = vpop.f32.mrf.mxu0 }
  0x96   :  { %v87_v21 = vadd.f32 %v355_v18, %v86_v20 }
  0x98   :  { %v90_v23 = vmax.f32 %v87_v21, 0.0 }
  0x9a   :  { %v91_v24 = vpack.c.bf16 %v90_v23, %v89_v22 }
  0x9c   :  { %168 = vmatmul.bf16.vlgmr.msra.gmra.mxu1 %v91_v24 }
 0x119   :  { %v169_v29 = vpop.f32.mrf.mxu1 }
 0x11a   :  { %v170_v31 = vadd.f32 %v356_v30, %v169_v29 }
 0x11c   :  { %v174_v34 = vmax.f32 %v170_v31, 0.0 }
 0x121   :  { %v171_v32 = vpop.f32.mrf.mxu1 }
 0x122   :  { %v172_v33 = vadd.f32 %v356_v30, %v171_v32 }
 0x124   :  { %v175_v35 = vmax.f32 %v172_v33, 0.0 }
 0x126   :  { %v176_v36 = vpack.c.bf16 %v175_v35, %v174_v34 }
 0x128   :  { %249 = vmatmul.bf16.vlgmr.msra.gmra.mxu2 %v176_v36 }
 0x1ab   :  { %v250_v38 = vpop.f32.mrf.mxu2 }
 0x1ac   :  { %v259_v39 = vadd.f32 %v357_v37, %v250_v38 }
 0x1ae   :  { %262 = vst.msk [vmem:[%s491_s7] sm:$0xff] %vm261_vm2, %v259_v39 }
 0x1b3   :  { %v252_v40 = vpop.f32.mrf.mxu2 }
 0x1b4   :  { %v260_v41 = vadd.f32 %v357_v37, %v252_v40 }
 0x1b6   :  { %263 = vst.msk [vmem:[%s491_s7 + $0x8] sm:$0xff] %vm261_vm2, %v260_v41 }
 0x1b7   :  { %268 = vsyncpa [#allocation3], 1 }
 0x1b8   :  { %269 = vsyncpa [#allocation5], 1 }

</bundles_post_ra>
